<compile_context>
chip_gen: v7x
topology: tpu7x:2x2x1
jax: 0.10.0
libtpu: 0.0.40
codegen_flags: <defaults>
</compile_context>

<pallas_src>
import functools

import jax
import jax.numpy as jnp
from jax.experimental import pallas as pl
from jax.experimental.pallas import tpu as pltpu


# ---------------------------------------------------------------------------
# Kernel
# ---------------------------------------------------------------------------
def _linear_sigmoid_kernel(x_ref, w_ref, b_ref, o_ref):
    # x_ref : (tm, K)  input dtype (cast in-kernel, like torch .float())
    # w_ref : (K, N)   param dtype (f32 default, bf16 optional) -- pre-transposed
    # b_ref : (1, N)   float32
    # o_ref : (tm, N)  float32
    x = x_ref[...].astype(w_ref.dtype)
    y = jnp.dot(x, w_ref[...], preferred_element_type=jnp.float32)
    o_ref[...] = jax.nn.sigmoid(y + b_ref[...])


# ---------------------------------------------------------------------------
# Wrappers
# ---------------------------------------------------------------------------
def _linear_sigmoid(x2d, w_t, b2d, *, tm=512):
    """sigmoid(x2d @ w_t + b2d) with w_t pre-transposed to (K, N).

    x2d : (M, K)   any dtype
    w_t : (K, N)   param dtype (already prepared)
    b2d : (1, N)   float32 (already prepared)
    returns (M, N) float32
    """
    m, k = x2d.shape
    kw, n = w_t.shape
    assert k == kw, f"input_size mismatch: {k} vs {kw}"

    if m <= tm:
        # Overhead-bound small-M path: one VMEM block, no grid machinery.
        return pl.pallas_call(
            _linear_sigmoid_kernel,
            out_shape=jax.ShapeDtypeStruct((m, n), jnp.float32),
            in_specs=[
                pl.BlockSpec(memory_space=pltpu.MemorySpace.VMEM),
                pl.BlockSpec(memory_space=pltpu.MemorySpace.VMEM),
                pl.BlockSpec(memory_space=pltpu.MemorySpace.VMEM),
            ],
            out_specs=pl.BlockSpec(memory_space=pltpu.MemorySpace.VMEM),
        )(x2d, w_t, b2d)

    # Large-M path: 1-D grid over row blocks, weight/bias resident in VMEM.
    grid = (pl.cdiv(m, tm),)
    return pl.pallas_call(
        _linear_sigmoid_kernel,
        out_shape=jax.ShapeDtypeStruct((m, n), jnp.float32),
        grid_spec=pltpu.PrefetchScalarGridSpec(
            num_scalar_prefetch=0,
            grid=grid,
            in_specs=[
                pl.BlockSpec((tm, k), lambda i: (i, 0)),   # x row tiles (pipelined)
                pl.BlockSpec((k, n), lambda i: (0, 0)),    # weight: resident
                pl.BlockSpec((1, n), lambda i: (0, 0)),    # bias:   resident
            ],
            out_specs=pl.BlockSpec((tm, n), lambda i: (i, 0)),
        ),
        compiler_params=pltpu.CompilerParams(
            dimension_semantics=("parallel",),   # shard row blocks across TCs (v7x)
            vmem_limit_bytes=64 << 20,           # generous but bounded (v7x-safe)
        ),
    )(x2d, w_t, b2d)


def prepare_params(weight, bias, *, param_dtype=jnp.float32):
    """One-time parameter prep (hoisted out of the per-call path).

    weight : (num_classes, input_size)  -- torch nn.Linear layout
    bias   : (num_classes,)
    Returns (w_t, b2d) with w_t = weight.T in param_dtype (K, N), b2d (1, N) f32.
    """
    w_t = jnp.asarray(weight).astype(param_dtype).T
    b2d = jnp.reshape(jnp.asarray(bias).astype(jnp.float32), (1, -1))
    return w_t, b2d


def make_nn_forward(weight, bias, *, param_dtype=jnp.float32, tm=512):
    """Factory: returns (forward, forward_batched) closures over prepared params.

    forward(x):         module-faithful path; x flattened like torch .view(-1),
                         returns (num_classes,) float32.
    forward_batched(x): (B, input_size) -> (B, num_classes) float32.
    """
    w_t, b2d = prepare_params(weight, bias, param_dtype=param_dtype)
    input_size = w_t.shape[0]

    @jax.jit
    def forward(x):
        x_flat = jnp.reshape(x, (1, input_size))   # metadata-only reshape
        return _linear_sigmoid(x_flat, w_t, b2d, tm=tm)[0]

    @jax.jit
    def forward_batched(xb):
        return _linear_sigmoid(xb, w_t, b2d, tm=tm)

    return forward, forward_batched


# Convenience one-shot entry points (param prep not amortized; prefer the factory).
def nn_forward(x, weight, bias):
    w_t, b2d = prepare_params(weight, bias)
    num_classes, input_size = weight.shape
    x_flat = jnp.reshape(x, (1, input_size))
    return _linear_sigmoid(x_flat, w_t, b2d)[0]


def nn_forward_batched(xb, weight, bias):
    w_t, b2d = prepare_params(weight, bias)
    return _linear_sigmoid(xb, w_t, b2d)


# ---------------------------------------------------------------------------
# Self-test
# ---------------------------------------------------------------------------
if __name__ == "__main__":
    # Shapes consistent with the module: forward flattens everything, so
    # input_size equals the number of elements of x.
    #   x: (1, 16, 16) -> input_size = 256, num_classes = 10
    input_size = 256
    num_classes = 10

    key = jax.random.PRNGKey(0)
    kx, kw, kb, kb8, kbig = jax.random.split(key, 5)

    x = jax.random.normal(kx, (1, 16, 16), dtype=jnp.float32)

    # Deterministic init mimicking nn.Linear's uniform(-1/sqrt(K), 1/sqrt(K)).
    bound = 1.0 / jnp.sqrt(jnp.float32(input_size))
    weight = jax.random.uniform(kw, (num_classes, input_size),
                                minval=-bound, maxval=bound, dtype=jnp.float32)
    bias = jax.random.uniform(kb, (num_classes,),
                              minval=-bound, maxval=bound, dtype=jnp.float32)

    forward, forward_batched = make_nn_forward(weight, bias)

    # --- module-faithful single-sample path (params prepared once) ---
    out = jax.block_until_ready(forward(x))
    ref = jax.nn.sigmoid(weight @ jnp.reshape(x, (-1,)) + bias)
    assert out.shape == (num_classes,)
    assert jnp.allclose(out, ref, atol=1e-5, rtol=1e-5), "mismatch (single)"

    # --- small batch: single-block path ---
    B_small = 8
    xb_small = jax.random.normal(kb8, (B_small, input_size), dtype=jnp.float32)
    out_s = jax.block_until_ready(forward_batched(xb_small))
    ref_s = jax.nn.sigmoid(xb_small @ weight.T + bias[None, :])
    assert out_s.shape == (B_small, num_classes)
    assert jnp.allclose(out_s, ref_s, atol=1e-5, rtol=1e-5), "mismatch (small batch)"

    # --- large batch: gridded, pipelined, batch axis parallel ---
    B_big = 1024  # 2 row blocks of tm=512
    xb_big = jax.random.normal(kbig, (B_big, input_size), dtype=jnp.float32)
    out_b = jax.block_until_ready(forward_batched(xb_big))
    ref_b = jax.nn.sigmoid(xb_big @ weight.T + bias[None, :])
    assert out_b.shape == (B_big, num_classes)
    assert jnp.allclose(out_b, ref_b, atol=1e-5, rtol=1e-5), "mismatch (large batch)"

    # --- optional bf16 operand path (v5e-friendly, f32 accumulation) ---
    _, forward_batched_bf16 = make_nn_forward(weight, bias, param_dtype=jnp.bfloat16)
    out_bf = jax.block_until_ready(forward_batched_bf16(xb_big))
    assert jnp.allclose(out_bf, ref_b, atol=1e-2), "mismatch (bf16 path)"

    print("KERNEL_OK")
</pallas_src>

<mosaic_0001>
module attributes {stable_mosaic.version = 11 : i64} {
  func.func @_linear_sigmoid_kernel(%arg0: memref<1x256xf32, #tpu.memory_space<vmem>>, %arg1: memref<256x10xf32, #tpu.memory_space<vmem>>, %arg2: memref<1x10xf32, #tpu.memory_space<vmem>>, %arg3: memref<1x10xf32, #tpu.memory_space<vmem>>) attributes {dimension_semantics = [], scalar_prefetch = 0 : i64, scratch_operands = 0 : i64, tpu.core_type = #tpu.core_type<tc>} {
    %c0 = arith.constant 0 : index
    %c0_0 = arith.constant 0 : index
    %0 = vector.load %arg0[%c0, %c0_0] : memref<1x256xf32, #tpu.memory_space<vmem>>, vector<1x256xf32>
    %c0_1 = arith.constant 0 : index
    %c0_2 = arith.constant 0 : index
    %1 = vector.load %arg1[%c0_1, %c0_2] : memref<256x10xf32, #tpu.memory_space<vmem>>, vector<256x10xf32>
    %cst = arith.constant dense<0.000000e+00> : vector<1x10xf32>
    %2 = tpu.matmul %0, %1, %cst {dimension_numbers = #tpu.dot_dimension_numbers<[1], [0], [0], [1], [0, 0, 1, 1], [], []>} : vector<1x256xf32>, vector<256x10xf32>, vector<1x10xf32> -> vector<1x10xf32>
    %c0_3 = arith.constant 0 : index
    %c0_4 = arith.constant 0 : index
    %3 = vector.load %arg2[%c0_3, %c0_4] : memref<1x10xf32, #tpu.memory_space<vmem>>, vector<1x10xf32>
    %4 = arith.addf %2, %3 : vector<1x10xf32>
    %5 = arith.negf %4 : vector<1x10xf32>
    %6 = math.exp %5 : vector<1x10xf32>
    %cst_5 = arith.constant 1.000000e+00 : f32
    %7 = vector.broadcast %cst_5 : f32 to vector<1x10xf32>
    %8 = arith.addf %7, %6 : vector<1x10xf32>
    %9 = arith.divf %7, %8 : vector<1x10xf32>
    %c0_6 = arith.constant 0 : index
    %c0_7 = arith.constant 0 : index
    %10 = vector.load %arg3[%c0_6, %c0_7] : memref<1x10xf32, #tpu.memory_space<vmem>>, vector<1x10xf32>
    tpu.vector_store %arg3[%c0_6, %c0_7], %9 {strides = array<i32>} : memref<1x10xf32, #tpu.memory_space<vmem>>, vector<1x10xf32>,
    return
  }
}

</mosaic_0001>

<bundles_post_ra>
// kernel: forward.1
= control target key start
LH: loop header
LB: loop body
LE: loop exit
PB: predicated region body
PF: predicated region fallthrough
CT: control target
= control target key end

     0   :  { %8 = vsyncpa [#allocation3], 0  ;;  %s345_s0 = inlined_call_operand.vmem [shape: f32[1,256], index: 0, kind: input, shape index: {}]   ;;  %s346_s1 = inlined_call_operand.hbm [shape: f32[256,10], index: 1, kind: input, shape index: {}]   ;;  %s347_s2 = inlined_call_operand.vmem [shape: f32[1,10], index: 2, kind: input, shape index: {}]   ;;  %s348_s3 = inlined_call_operand.hbm [shape: f32[1,10], index: 3, kind: output, shape index: {}]  }
   0x1   :  { %9 = vsyncpa [#allocation4], 0  ;;  %s291_s12 = smov [#allocation2]   ;;  %s243_s16 = scalar_lea.hbm %s346_s1, 4096 }
   0x2   :  { %s17_s13 = sshll.u32 %s291_s12, 4  ;;  %p244_p0 = scmp.ne.s32.totalorder %s346_s1, %s243_s16  ;;  %s18_s13 = int_to_ptr.vmem [resolvable:$true] %s17_s13 }
   0x3   :  { %p247_p1 = scmp.lt.u32.totalorder %s243_s16, %s346_s1 }
   0x5   :  { %p249_p2 = pnand %p247_p1, %p244_p0 }
   0x7   :  { %252 = shalt.err (!%p249_p2)
}
   0x8   :  { %s253_s21 = scalar_lea.vmem %s18_s13, 4096  ;;  %p258_p4 = scmp.lt.s32.totalorder %s18_s13, %s18_s13 }
   0x9   :  { %p254_p3 = scmp.ne.s32.totalorder %s18_s13, %s253_s21  ;;  %p259_p5 = scmp.lt.s32.totalorder %s253_s21, %s253_s21 }
   0xb   :  { %p260_p6 = por %p259_p5, %p258_p4 }
   0xd   :  { %p261_p7 = pnand %p260_p6, %p254_p3 }
   0xf   :  { %264 = shalt.err (!%p261_p7)
}
  0x10   :  { %s292_s22 = smov 128   ;;  %s293_s23 = smov 8  }
  0x11   :  { %23 = dma.hbm_to_vmem [thread:$0]  %s346_s1, 4096, %s18_s13, [#allocation3], %s292_s22, %s292_s22, %s293_s23  }
  0x12   :  { %287 = dma.done.wait [#allocation3], 4096  }
  0x13   :  { %288 = vsyncadd [#allocation3], 4294963200  ;;  %v64_v0 = vlaneseq  ;;  %v46_v1 = vld [vmem:[#allocation2 + $0x80] sm:$0xff]  ;;  %v47_v2 = vld [vmem:[#allocation2 + $0x88] sm:$0xff]  ;;  %s294_s28 = smov [#allocation5]   ;;  %vm150_vm0 = vcmask 73728  }
  0x14   :  { %v30_v3 = vld [vmem:[#allocation2] sm:$0xff]  ;;  %v203_v4 = vpack.c.bf16 %v47_v2, %v46_v1  ;;  %v31_v5 = vld [vmem:[#allocation2 + $0x8] sm:$0xff]  ;;  %v48_v6 = vld [vmem:[#allocation2 + $0x90] sm:$0xff]  ;;  %s158_s29 = sshll.u32 %s294_s28, 4  ;;  %s159_s29 = int_to_ptr.vmem [resolvable:$true] %s158_s29 }
  0x15   :  { %v49_v7 = vld [vmem:[#allocation2 + $0x98] sm:$0xff]  ;;  %v205_v8 = vpack.c.bf16 %v31_v5, %v30_v3  ;;  %v32_v10 = vld [vmem:[#allocation2 + $0x10] sm:$0xff]  ;;  %v50_v12 = vld [vmem:[#allocation2 + $0xa0] sm:$0xff]  ;;  %v65_v14 = vshrl.u32 %v64_v0, 7  ;;  %s265_s30 = scalar_lea.vmem %s159_s29, 16  ;;  %s269_s4 = scalar_lea.vmem %s159_s29, 32 }
  0x16   :  { %v207_v9 = vpack.c.bf16 %v49_v7, %v48_v6  ;;  %v33_v11 = vld [vmem:[#allocation2 + $0x18] sm:$0xff]  ;;  %204 = vmatprep.subr.bf16.mxu0 %v203_v4  ;;  %v51_v13 = vld [vmem:[#allocation2 + $0xa8] sm:$0xff]  ;;  %v34_v17 = vld [vmem:[#allocation2 + $0x20] sm:$0xff]  ;;  %p266_p8 = scmp.ne.s32.totalorder %s159_s29, %s265_s30  ;;  %p270_p9 = scmp.lt.s32.totalorder %s159_s29, %s159_s29 }
  0x17   :  { %206 = vmatpush3.bf16.msra.mxu0 %v205_v8  ;;  %v209_v15 = vpack.c.bf16 %v33_v11, %v32_v10  ;;  %v211_v16 = vpack.c.bf16 %v51_v13, %v50_v12  ;;  %v35_v18 = vld [vmem:[#allocation2 + $0x28] sm:$0xff]  ;;  %v52_v19 = vld [vmem:[#allocation2 + $0xb0] sm:$0xff]  ;;  %v53_v20 = vld [vmem:[#allocation2 + $0xb8] sm:$0xff]  ;;  %v70_v21 = vsub.s32 1, %v65_v14  ;;  %v66_v52 = vsub.s32 0, %v65_v14  ;;  %p271_p10 = scmp.lt.s32.totalorder %s269_s4, %s265_s30 }
  0x18   :  { %208 = vmatprep.subr.bf16.mxu0 %v207_v9  ;;  %v213_v22 = vpack.c.bf16 %v35_v18, %v34_v17  ;;  %v215_v23 = vpack.c.bf16 %v53_v20, %v52_v19  ;;  %v36_v24 = vld [vmem:[#allocation2 + $0x30] sm:$0xff]  ;;  %v37_v25 = vld [vmem:[#allocation2 + $0x38] sm:$0xff]  ;;  %v54_v26 = vld [vmem:[#allocation2 + $0xc0] sm:$0xff] }
  0x19   :  { %v55_v27 = vld [vmem:[#allocation2 + $0xc8] sm:$0xff]  ;;  %v29_v28 = vld [vmem:[%s345_s0] sm:$0x3]  ;;  %v217_v30 = vpack.c.bf16 %v37_v25, %v36_v24  ;;  %v56_v34 = vld [vmem:[#allocation2 + $0xd0] sm:$0xff]  ;;  %p272_p11 = por %p271_p10, %p270_p9 }
  0x1a   :  { %v71_v29 = vrot.slane %v29_v28, %v70_v21  ;;  %v219_v31 = vpack.c.bf16 %v55_v27, %v54_v26  ;;  %v38_v32 = vld [vmem:[#allocation2 + $0x40] sm:$0xff]  ;;  %v39_v33 = vld [vmem:[#allocation2 + $0x48] sm:$0xff]  ;;  %v57_v35 = vld [vmem:[#allocation2 + $0xd8] sm:$0xff]  ;;  %v67_v54 = vrot.slane %v29_v28, %v66_v52 }
  0x1b   :  { %210 = vmatpush3.bf16.msra.mxu0 %v209_v15  ;;  %v221_v36 = vpack.c.bf16 %v39_v33, %v38_v32  ;;  %v223_v37 = vpack.c.bf16 %v57_v35, %v56_v34  ;;  %v40_v38 = vld [vmem:[#allocation2 + $0x50] sm:$0xff]  ;;  %v41_v39 = vld [vmem:[#allocation2 + $0x58] sm:$0xff]  ;;  %v58_v40 = vld [vmem:[#allocation2 + $0xe0] sm:$0xff]  ;;  %p273_p12 = pnand %p272_p11, %p266_p8 }
  0x1c   :  { %212 = vmatprep.subr.bf16.mxu0 %v211_v16  ;;  %138 = vmatprep.mubr.f32.mxu0 %v71_v29  ;;  %v59_v41 = vld [vmem:[#allocation2 + $0xe8] sm:$0xff]  ;;  %v225_v42 = vpack.c.bf16 %v41_v39, %v40_v38  ;;  %v42_v44 = vld [vmem:[#allocation2 + $0x60] sm:$0xff]  ;;  %v60_v46 = vld [vmem:[#allocation2 + $0xf0] sm:$0xff] }
  0x1d   :  { %v227_v43 = vpack.c.bf16 %v59_v41, %v58_v40  ;;  %v43_v45 = vld [vmem:[#allocation2 + $0x68] sm:$0xff]  ;;  %v61_v47 = vld [vmem:[#allocation2 + $0xf8] sm:$0xff]  ;;  %v44_v50 = vld [vmem:[#allocation2 + $0x70] sm:$0xff] }
  0x1e   :  { %v229_v48 = vpack.c.bf16 %v43_v45, %v42_v44  ;;  %v231_v49 = vpack.c.bf16 %v61_v47, %v60_v46  ;;  %v45_v51 = vld [vmem:[#allocation2 + $0x78] sm:$0xff]  ;;  %v62_v56 = vld [vmem:[%s347_s2] sm:$0x1] }
  0x1f   :  { %214 = vmatpush3.bf16.msra.mxu0 %v213_v22  ;;  %v233_v53 = vpack.c.bf16 %v45_v51, %v44_v50 }
  0x20   :  { %216 = vmatprep.subr.bf16.mxu0 %v215_v23 }
  0x23   :  { %218 = vmatpush3.bf16.msra.mxu0 %v217_v30 }
  0x24   :  { %220 = vmatprep.subr.bf16.mxu0 %v219_v31 }
  0x27   :  { %222 = vmatpush3.bf16.msra.mxu0 %v221_v36 }
  0x28   :  { %224 = vmatprep.subr.bf16.mxu0 %v223_v37 }
  0x2b   :  { %226 = vmatpush3.bf16.msra.mxu0 %v225_v42 }
  0x2c   :  { %228 = vmatprep.subr.bf16.mxu0 %v227_v43 }
  0x2f   :  { %230 = vmatpush3.bf16.msra.mxu0 %v229_v48 }
  0x30   :  { %232 = vmatprep.subr.bf16.mxu0 %v231_v49 }
  0x33   :  { %234 = vmatpush3.bf16.msra.mxu0 %v233_v53 }
  0x36   :  { %139 = vmatmul.mubr.f32.vlgmr.msra.gmra.mrb[0].mxu0 %v67_v54 }
 0x109   :  { %v200_v55 = vpop.f32.mrb[0].mxu0 }
 0x10a   :  { %v201_v57 = vpop.f32.mrb[1].mxu0 }
 0x10b   :  { %v202_v58 = vadd.f32 %v201_v57, %v200_v55 }
 0x10d   :  { %v141_v59 = vadd.f32 %v202_v58, %v62_v56 }
 0x10f   :  { %v167_v60 = vmul.f32 -1.442695, %v141_v59 }
 0x111   :  { %239 = vpow2.f32 %v167_v60 }
 0x11b   :  { %v240_v61 = vpop.eup %239 }
 0x11c   :  { %v147_v62 = vadd.f32 1.0, %v240_v61 }
 0x11e   :  { %241 = vrcp.f32 %v147_v62 }
 0x128   :  { %v242_v63 = vpop.eup %241 }
 0x129   :  { %151 = vst.msk [vmem:[#allocation5] sm:$0x1] %vm150_vm0, %v242_v63 }
 0x12a   :  { %276 = shalt.err (!%p273_p12)
}
 0x12b   :  { %s277_s6 = scalar_lea.hbm %s348_s3, 16 }
 0x12c   :  { %p278_p13 = scmp.ne.s32.totalorder %s348_s3, %s277_s6  ;;  %p281_p0 = scmp.lt.u32.totalorder %s277_s6, %s348_s3 }
 0x12e   :  { %p283_p1 = pnand %p281_p0, %p278_p13 }
 0x130   :  { %286 = shalt.err (!%p283_p1)
}
 0x131   :  { %161 = dma.vmem_to_hbm [thread:$0]  %s159_s29, 16, %s348_s3, [#allocation4]  }
 0x132   :  { %289 = dma.done.wait [#allocation4], 16  }
 0x133   :  { %290 = vsyncadd [#allocation4], 4294967280 }
 0x134   :  { %165 = vsyncpa [#allocation3], 1 }
 0x135   :  { %166 = vsyncpa [#allocation4], 1 }

</bundles_post_ra>
